<compile_context>
chip_gen: v6e
topology: v6e:2x2x1
jax: 0.10.0
libtpu: 0.0.40
codegen_flags: <defaults>
</compile_context>

<pallas_src>
import functools

import jax
import jax.numpy as jnp
from jax import lax
from jax.experimental import pallas as pl
from jax.experimental.pallas import tpu as pltpu


def _round_up(x, m):
    return ((x + m - 1) // m) * m


def _mlp_kernel(x_ref, w1_ref, b1_ref, w2_ref, b2_ref, w3_ref, b3_ref,
                out_ref, *, n_classes):
    """Grid-less kernel; all operands VMEM-resident.

    x_ref  : (B, 3072) bf16
    w1_ref : (64, 3072) bf16   (large dim on the lane axis -> dense tiles)
    b1_ref : (1, 64)  f32
    w2_ref : (64, 32) f32,  b2_ref: (1, 32) f32
    w3_ref : (32, n_classes) f32, b3_ref: (1, n_classes) f32
    out_ref: (B, slab_cols) f32 lane-dense output slab:
        [0:32)                         features
        [32:32+n)                      logits
        [32+n:32+2n)                   prob (softmax over batch axis)
        [32+2n:32+2n+1)                Y_hat index (stored as f32)
    """
    # layer1: Linear(3072, 64) + ReLU. bf16 x bf16 on the MXU, f32 accumulation.
    # W1 is (64, 3072): contract dim 1 of both operands (an "NT" matmul), so the
    # big operand stays lane-dense instead of being 64->128 lane padded.
    h1 = lax.dot_general(
        x_ref[...], w1_ref[...],
        dimension_numbers=(((1,), (1,)), ((), ())),
        preferred_element_type=jnp.float32,
    ) + b1_ref[...]
    h1 = jnp.maximum(h1, 0.0)

    # layer2: Linear(64, 32) + ReLU
    feat = jnp.dot(h1, w2_ref[...], preferred_element_type=jnp.float32) + b2_ref[...]
    feat = jnp.maximum(feat, 0.0)

    # classifier: Linear(32, n_classes)
    logits = jnp.dot(feat, w3_ref[...], preferred_element_type=jnp.float32) + b3_ref[...]

    # prob = F.softmax(logits, dim=0): softmax over the BATCH axis (as in the torch code).
    m0 = jnp.max(logits, axis=0, keepdims=True)
    e = jnp.exp(logits - m0)
    prob = e * pl.reciprocal(jnp.sum(e, axis=0, keepdims=True), approx=False)

    # Y_hat = torch.topk(logits, 1, dim=1)[1]: first index of the row-wise max.
    row_max = jnp.max(logits, axis=1, keepdims=True)
    col_idx = lax.broadcasted_iota(jnp.int32, logits.shape, 1)
    big = jnp.array(jnp.iinfo(jnp.int32).max, jnp.int32)
    yhat = jnp.min(jnp.where(logits == row_max, col_idx, big), axis=1, keepdims=True)

    # Single lane-dense output slab: zero, then fill the used column ranges.
    out_ref[...] = jnp.zeros_like(out_ref)
    out_ref[:, 0:32] = feat
    out_ref[:, 32:32 + n_classes] = logits
    out_ref[:, 32 + n_classes:32 + 2 * n_classes] = prob
    out_ref[:, 32 + 2 * n_classes:32 + 2 * n_classes + 1] = yhat.astype(jnp.float32)


@functools.partial(jax.jit, static_argnames=("n_classes",))
def first_model_cifar_forward(x_nchw, params, n_classes):
    """x_nchw: (B, 3, 32, 32) float32. Returns (features, logits, prob, Y_hat)."""
    B = x_nchw.shape[0]
    # torch .view(B, -1) row-major C*H*W flatten; feed bf16 activations so the
    # MXU consumes a uniform bf16 LHS/RHS (input DMA halved too).
    x_flat = x_nchw.reshape(B, -1).astype(jnp.bfloat16)

    w1, b1, w2, b2, w3, b3 = params
    vmem = pl.BlockSpec(memory_space=pltpu.MemorySpace.VMEM)

    slab_cols = _round_up(32 + 2 * n_classes + 1, 128)
    out_shape = jax.ShapeDtypeStruct((B, slab_cols), jnp.float32)

    slab = pl.pallas_call(
        functools.partial(_mlp_kernel, n_classes=n_classes),
        out_shape=out_shape,
        in_specs=[vmem] * 7,
        out_specs=vmem,
    )(x_flat, w1, b1, w2, b2, w3, b3)

    features = slab[:, 0:32]
    logits = slab[:, 32:32 + n_classes]
    prob = slab[:, 32 + n_classes:32 + 2 * n_classes]
    y_hat = slab[:, 32 + 2 * n_classes:32 + 2 * n_classes + 1].astype(jnp.int32)
    return features, logits, prob, y_hat


def init_params(key, n_classes):
    """Mirrors nn.Linear init.  W1 is stored transposed (out, in) = (64, 3072)
    in bf16 so its large dim lies on the lane axis; W2/W3 stay (in, out) f32
    (they are tiny).  Biases are (1, out) rows for clean TPU broadcasting."""
    k = jax.random.split(key, 6)

    def linear(kw, kb, fan_in, fan_out, w_dtype=jnp.float32, transpose=False):
        bound = 1.0 / (fan_in ** 0.5)
        shape = (fan_out, fan_in) if transpose else (fan_in, fan_out)
        w = jax.random.uniform(kw, shape, jnp.float32, -bound, bound).astype(w_dtype)
        b = jax.random.uniform(kb, (1, fan_out), jnp.float32, -bound, bound)
        return w, b

    w1, b1 = linear(k[0], k[1], 32 * 32 * 3, 64, w_dtype=jnp.bfloat16, transpose=True)
    w2, b2 = linear(k[2], k[3], 64, 32)
    w3, b3 = linear(k[4], k[5], 32, n_classes)
    return (w1, b1, w2, b2, w3, b3)


if __name__ == "__main__":
    n_classes = 10
    batch = 2

    key = jax.random.PRNGKey(0)
    kx, kp = jax.random.split(key)

    # CIFAR-shaped input (NCHW), small batch.
    x = jax.random.normal(kx, (batch, 3, 32, 32), jnp.float32)
    params = init_params(kp, n_classes)

    features, logits, prob, y_hat = first_model_cifar_forward(x, params, n_classes)
    jax.block_until_ready((features, logits, prob, y_hat))

    # Pure-JAX reference with the same bf16-rounded x / W1 (f32 math); the only
    # expected difference vs. the kernel is f32 accumulation order on the MXU.
    w1, b1, w2, b2, w3, b3 = params
    x_flat = x.reshape(batch, -1).astype(jnp.bfloat16).astype(jnp.float32)
    w1_f32 = w1.astype(jnp.float32)                     # (64, 3072)
    h1 = jnp.maximum(x_flat @ w1_f32.T + b1, 0.0)
    feat_ref = jnp.maximum(h1 @ w2 + b2, 0.0)
    logits_ref = feat_ref @ w3 + b3
    prob_ref = jax.nn.softmax(logits_ref, axis=0)
    yhat_ref = jnp.argmax(logits_ref, axis=1, keepdims=True).astype(jnp.int32)

    assert jnp.allclose(features, feat_ref, atol=2e-3, rtol=2e-3), "features mismatch"
    assert jnp.allclose(logits, logits_ref, atol=2e-3, rtol=2e-3), "logits mismatch"
    assert jnp.allclose(prob, prob_ref, atol=2e-3, rtol=2e-3), "prob mismatch"
    assert jnp.array_equal(y_hat, yhat_ref), "Y_hat mismatch"

    print("KERNEL_OK")
</pallas_src>

<mosaic_0001>
module attributes {stable_mosaic.version = 11 : i64} {
  func.func @_mlp_kernel(%arg0: memref<2x3072xbf16, #tpu.memory_space<vmem>>, %arg1: memref<64x3072xbf16, #tpu.memory_space<vmem>>, %arg2: memref<1x64xf32, #tpu.memory_space<vmem>>, %arg3: memref<64x32xf32, #tpu.memory_space<vmem>>, %arg4: memref<1x32xf32, #tpu.memory_space<vmem>>, %arg5: memref<32x10xf32, #tpu.memory_space<vmem>>, %arg6: memref<1x10xf32, #tpu.memory_space<vmem>>, %arg7: memref<2x128xf32, #tpu.memory_space<vmem>>) attributes {dimension_semantics = [], scalar_prefetch = 0 : i64, scratch_operands = 0 : i64, tpu.core_type = #tpu.core_type<tc>} {
    %c0 = arith.constant 0 : index
    %c0_0 = arith.constant 0 : index
    %0 = vector.load %arg0[%c0, %c0_0] : memref<2x3072xbf16, #tpu.memory_space<vmem>>, vector<2x3072xbf16>
    %c0_1 = arith.constant 0 : index
    %c0_2 = arith.constant 0 : index
    %1 = vector.load %arg1[%c0_1, %c0_2] : memref<64x3072xbf16, #tpu.memory_space<vmem>>, vector<64x3072xbf16>
    %cst = arith.constant dense<0.000000e+00> : vector<2x64xf32>
    %2 = tpu.matmul %0, %1, %cst {dimension_numbers = #tpu.dot_dimension_numbers<[1], [1], [0], [0], [0, 0, 1, 0], [], []>} : vector<2x3072xbf16>, vector<64x3072xbf16>, vector<2x64xf32> -> vector<2x64xf32>
    %c0_3 = arith.constant 0 : index
    %c0_4 = arith.constant 0 : index
    %3 = vector.load %arg2[%c0_3, %c0_4] : memref<1x64xf32, #tpu.memory_space<vmem>>, vector<1x64xf32>
    %4 = vector.broadcast %3 : vector<1x64xf32> to vector<2x64xf32>
    %5 = arith.addf %2, %4 : vector<2x64xf32>
    %cst_5 = arith.constant 0.000000e+00 : f32
    %6 = vector.broadcast %cst_5 : f32 to vector<2x64xf32>
    %7 = arith.maximumf %5, %6 : vector<2x64xf32>
    %c0_6 = arith.constant 0 : index
    %c0_7 = arith.constant 0 : index
    %8 = vector.load %arg3[%c0_6, %c0_7] : memref<64x32xf32, #tpu.memory_space<vmem>>, vector<64x32xf32>
    %cst_8 = arith.constant dense<0.000000e+00> : vector<2x32xf32>
    %9 = tpu.matmul %7, %8, %cst_8 {dimension_numbers = #tpu.dot_dimension_numbers<[1], [0], [0], [1], [0, 0, 1, 1], [], []>} : vector<2x64xf32>, vector<64x32xf32>, vector<2x32xf32> -> vector<2x32xf32>
    %c0_9 = arith.constant 0 : index
    %c0_10 = arith.constant 0 : index
    %10 = vector.load %arg4[%c0_9, %c0_10] : memref<1x32xf32, #tpu.memory_space<vmem>>, vector<1x32xf32>
    %11 = vector.broadcast %10 : vector<1x32xf32> to vector<2x32xf32>
    %12 = arith.addf %9, %11 : vector<2x32xf32>
    %cst_11 = arith.constant 0.000000e+00 : f32
    %13 = vector.broadcast %cst_11 : f32 to vector<2x32xf32>
    %14 = arith.maximumf %12, %13 : vector<2x32xf32>
    %c0_12 = arith.constant 0 : index
    %c0_13 = arith.constant 0 : index
    %15 = vector.load %arg5[%c0_12, %c0_13] : memref<32x10xf32, #tpu.memory_space<vmem>>, vector<32x10xf32>
    %cst_14 = arith.constant dense<0.000000e+00> : vector<2x10xf32>
    %16 = tpu.matmul %14, %15, %cst_14 {dimension_numbers = #tpu.dot_dimension_numbers<[1], [0], [0], [1], [0, 0, 1, 1], [], []>} : vector<2x32xf32>, vector<32x10xf32>, vector<2x10xf32> -> vector<2x10xf32>
    %c0_15 = arith.constant 0 : index
    %c0_16 = arith.constant 0 : index
    %17 = vector.load %arg6[%c0_15, %c0_16] : memref<1x10xf32, #tpu.memory_space<vmem>>, vector<1x10xf32>
    %18 = vector.broadcast %17 : vector<1x10xf32> to vector<2x10xf32>
    %19 = arith.addf %16, %18 : vector<2x10xf32>
    %cst_17 = arith.constant dense<0xFF800000> : vector<10xf32>
    %20 = vector.multi_reduction <maximumf>, %19, %cst_17 [0] : vector<2x10xf32> to vector<10xf32>
    %21 = vector.shape_cast %20 : vector<10xf32> to vector<1x10xf32>
    %22 = vector.broadcast %21 : vector<1x10xf32> to vector<2x10xf32>
    %23 = arith.subf %19, %22 : vector<2x10xf32>
    %24 = math.exp %23 : vector<2x10xf32>
    %cst_18 = arith.constant dense<0.000000e+00> : vector<10xf32>
    %25 = vector.multi_reduction <add>, %24, %cst_18 [0] : vector<2x10xf32> to vector<10xf32>
    %26 = vector.shape_cast %25 : vector<10xf32> to vector<1x10xf32>
    %27 = tpu.reciprocal %26 : vector<1x10xf32> -> vector<1x10xf32>
    %28 = vector.broadcast %27 : vector<1x10xf32> to vector<2x10xf32>
    %29 = arith.mulf %24, %28 : vector<2x10xf32>
    %cst_19 = arith.constant dense<0xFF800000> : vector<2xf32>
    %30 = vector.multi_reduction <maximumf>, %19, %cst_19 [1] : vector<2x10xf32> to vector<2xf32>
    %31 = vector.shape_cast %30 : vector<2xf32> to vector<2x1xf32>
    %32 = tpu.iota {dimensions = array<i32: 1>} : vector<2x10xi32>
    %33 = vector.broadcast %31 : vector<2x1xf32> to vector<2x10xf32>
    %34 = arith.cmpf oeq, %19, %33 : vector<2x10xf32>
    %c2147483647_i32 = arith.constant 2147483647 : i32
    %35 = vector.broadcast %c2147483647_i32 : i32 to vector<2x10xi32>
    %36 = arith.select %34, %32, %35 : vector<2x10xi1>, vector<2x10xi32>
    %cst_20 = arith.constant dense<2147483647> : vector<2xi32>
    %37 = vector.multi_reduction <minsi>, %36, %cst_20 [1] : vector<2x10xi32> to vector<2xi32>
    %38 = vector.shape_cast %37 : vector<2xi32> to vector<2x1xi32>
    %cst_21 = arith.constant 0.000000e+00 : f32
    %39 = vector.broadcast %cst_21 : f32 to vector<2x128xf32>
    %c0_22 = arith.constant 0 : index
    %c0_23 = arith.constant 0 : index
    %40 = vector.load %arg7[%c0_22, %c0_23] : memref<2x128xf32, #tpu.memory_space<vmem>>, vector<2x128xf32>
    tpu.vector_store %arg7[%c0_22, %c0_23], %39 {strides = array<i32>} : memref<2x128xf32, #tpu.memory_space<vmem>>, vector<2x128xf32>,
    %c0_24 = arith.constant 0 : index
    %c0_25 = arith.constant 0 : index
    %41 = vector.load %arg7[%c0_24, %c0_25] : memref<2x128xf32, #tpu.memory_space<vmem>>, vector<2x32xf32>
    tpu.vector_store %arg7[%c0_24, %c0_25], %14 {strides = array<i32>} : memref<2x128xf32, #tpu.memory_space<vmem>>, vector<2x32xf32>,
    %c0_26 = arith.constant 0 : index
    %c32 = arith.constant 32 : index
    %42 = vector.load %arg7[%c0_26, %c32] : memref<2x128xf32, #tpu.memory_space<vmem>>, vector<2x10xf32>
    tpu.vector_store %arg7[%c0_26, %c32], %19 {strides = array<i32>} : memref<2x128xf32, #tpu.memory_space<vmem>>, vector<2x10xf32>,
    %c0_27 = arith.constant 0 : index
    %c42 = arith.constant 42 : index
    %43 = vector.load %arg7[%c0_27, %c42] : memref<2x128xf32, #tpu.memory_space<vmem>>, vector<2x10xf32>
    tpu.vector_store %arg7[%c0_27, %c42], %29 {strides = array<i32>} : memref<2x128xf32, #tpu.memory_space<vmem>>, vector<2x10xf32>,
    %44 = arith.sitofp %38 : vector<2x1xi32> to vector<2x1xf32>
    %c0_28 = arith.constant 0 : index
    %c52 = arith.constant 52 : index
    %45 = vector.load %arg7[%c0_28, %c52] : memref<2x128xf32, #tpu.memory_space<vmem>>, vector<2x1xf32>
    tpu.vector_store %arg7[%c0_28, %c52], %44 {strides = array<i32>} : memref<2x128xf32, #tpu.memory_space<vmem>>, vector<2x1xf32>,
    return
  }
}

</mosaic_0001>

<bundles_post_ra>
// kernel: first_model_cifar_forward.1
= control target key start
LH: loop header
LB: loop body
LE: loop exit
PB: predicated region body
PF: predicated region fallthrough
CT: control target
= control target key end

     0   :  { %12 = vsyncpa [#allocation3], 0  ;;  %s1703_s24 = smov [#allocation2]   ;;  %s1893_s0 = inlined_call_operand.vmem [shape: bf16[2,3072], index: 0, kind: input, shape index: {}]   ;;  %s1894_s1 = inlined_call_operand.hbm [shape: bf16[64,3072], index: 1, kind: input, shape index: {}]   ;;  %s1895_s2 = inlined_call_operand.vmem [shape: f32[1,64], index: 2, kind: input, shape index: {}]   ;;  %s1896_s3 = inlined_call_operand.vmem [shape: f32[64,32], index: 3, kind: input, shape index: {}]   ;;  %s1897_s4 = inlined_call_operand.vmem [shape: f32[1,32], index: 4, kind: input, shape index: {}]   ;;  %s1898_s5 = inlined_call_operand.vmem [shape: f32[32,10], index: 5, kind: input, shape index: {}]   ;;  %s1899_s6 = inlined_call_operand.vmem [shape: f32[1,10], index: 6, kind: input, shape index: {}]   ;;  %s1900_s7 = inlined_call_operand.vmem [shape: f32[2,128], index: 7, kind: output, shape index: {}]  }
   0x1   :  { %s20_s25 = sshll.u32 %s1703_s24, 4  ;;  %s21_s25 = int_to_ptr.vmem [resolvable:$true] %s20_s25 }
   0x2   :  { %s1689_s26 = scalar_lea.vmem %s21_s25, 12288  ;;  %p1694_p1 = scmp.lt.s32.totalorder %s21_s25, %s21_s25 }
   0x3   :  { %p1690_p0 = scmp.ne.s32.totalorder %s21_s25, %s1689_s26  ;;  %p1695_p2 = scmp.lt.s32.totalorder %s1689_s26, %s1689_s26 }
   0x5   :  { %p1696_p3 = por %p1695_p2, %p1694_p1 }
   0x7   :  { %p1697_p4 = pnand %p1696_p3, %p1690_p0 }
   0x9   :  { %1700 = shalt.err (!%p1697_p4)
}
   0xa   :  { %s1704_s27 = smov 1536   ;;  %s1705_s28 = smov 96  }
   0xb   :  { %26 = dma.hbm_to_vmem [thread:$0]  %s1894_s1, 12288, %s21_s25, [#allocation3], %s1704_s27, %s1704_s27, %s1705_s28  }
   0xc   :  { %1701 = dma.done.wait [#allocation3], 12288  }
   0xd   :  { %1702 = vsyncadd [#allocation3], 4294955008  ;;  %v1706_v0 = vmov 1966171168   ;;  %v154_v2 = vlaneseq  ;;  %v116_v5 = vld [vmem:[#allocation2 + $0x240] sm:$0xff]  ;;  %v117_v7 = vld [vmem:[#allocation2 + $0x248] sm:$0xff] }
   0xe   :  { %v152_v1 = vunpack.c.l.s4 %v1706_v0  ;;  %v128_v6 = vld [vmem:[#allocation2 + $0x2a0] sm:$0xff]  ;;  %v129_v9 = vld [vmem:[#allocation2 + $0x2a8] sm:$0xff]  ;;  %v118_v42 = vld [vmem:[#allocation2 + $0x250] sm:$0xff]  ;;  %vm1708_vm0 = vmmov 0   ;;  %vm1297_vm1 = vcmask 523264   ;;  %vm1383_vm2 = vcmask 261120  }
   0xf   :  { %v155_v4 = vshrl.u32 %v154_v2, 7  ;;  %v1595_v8 = vcombine.high %v116_v5, %v128_v6  ;;  %v1594_v10 = vcombine.low %v116_v5, %v128_v6  ;;  %v92_v11 = vld [vmem:[#allocation2 + $0x180] sm:$0xff]  ;;  %v1597_v13 = vcombine.high %v117_v7, %v129_v9  ;;  %v93_v16 = vld [vmem:[#allocation2 + $0x188] sm:$0xff]  ;;  %v130_v43 = vld [vmem:[#allocation2 + $0x2b0] sm:$0xff] }
  0x10   :  { %v153_v3 = vunpack.c.0.s8 %v152_v1  ;;  %v104_v12 = vld [vmem:[#allocation2 + $0x1e0] sm:$0xff]  ;;  %v1596_v14 = vcombine.low %v117_v7, %v129_v9  ;;  %v105_v17 = vld [vmem:[#allocation2 + $0x1e8] sm:$0xff]  ;;  %v119_v44 = vld [vmem:[#allocation2 + $0x258] sm:$0xff]  ;;  %v1599_v49 = vcombine.high %v118_v42, %v130_v43  ;;  %v1598_v59 = vcombine.low %v118_v42, %v130_v43 }
  0x11   :  { %v1571_v15 = vcombine.high %v92_v11, %v104_v12  ;;  %809 = vmatprep.subr.bf16.mxu0 %v1595_v8  ;;  %v1573_v19 = vcombine.high %v93_v16, %v105_v17  ;;  %849 = vmatprep.subr.bf16.mxu1 %v1597_v13  ;;  %v41_v20 = vld [vmem:[%s1893_s0] sm:$0xff]  ;;  %v69_v24 = vld [vmem:[#allocation2 + $0xc8] sm:$0xff]  ;;  %v1570_v26 = vcombine.low %v92_v11, %v104_v12  ;;  %v131_v45 = vld [vmem:[#allocation2 + $0x2b8] sm:$0xff]  ;;  %vm1499_vm3 = vcmask 254976  }
  0x12   :  { %v1755_v18 = vsub.s32 %v153_v3, %v155_v4  ;;  %810 = vmatpush1.bf16.xpose.msra.mxu0 %v1594_v10  ;;  %850 = vmatpush1.bf16.xpose.msra.mxu1 %v1596_v14  ;;  %v68_v21 = vld [vmem:[#allocation2 + $0xc0] sm:$0xff]  ;;  %v81_v25 = vld [vmem:[#allocation2 + $0x128] sm:$0xff]  ;;  %v1572_v28 = vcombine.low %v93_v16, %v105_v17  ;;  %v150_v41 = vcombine.high %v41_v20, %v41_v20  ;;  %v94_v53 = vld [vmem:[#allocation2 + $0x190] sm:$0xff]  ;;  %vm1457_vm4 = vcmask 74752  }
  0x13   :  { %811 = vmatprep.subr.bf16.mxu0 %v1571_v15  ;;  %851 = vmatprep.subr.bf16.mxu1 %v1573_v19  ;;  %v80_v22 = vld [vmem:[#allocation2 + $0x120] sm:$0xff]  ;;  %v1549_v30 = vcombine.high %v69_v24, %v81_v25  ;;  %v45_v35 = vld [vmem:[#allocation2 + $0x8] sm:$0xff]  ;;  %v1548_v38 = vcombine.low %v69_v24, %v81_v25  ;;  %v1601_v50 = vcombine.high %v119_v44, %v131_v45  ;;  %v106_v54 = vld [vmem:[#allocation2 + $0x1f0] sm:$0xff]  ;;  %vm1505_vm7 = vcmask 337152  }
  0x14   :  { %v157_v23 = vrot.slane %v41_v20, %v1755_v18  ;;  %v1547_v29 = vcombine.high %v68_v21, %v80_v22  ;;  %v44_v33 = vld [vmem:[#allocation2] sm:$0xff]  ;;  %v57_v36 = vld [vmem:[#allocation2 + $0x68] sm:$0xff]  ;;  %v1546_v37 = vcombine.low %v68_v21, %v80_v22  ;;  %v1763_v46 = vrot.slane %v150_v41, %v1755_v18  ;;  %v95_v55 = vld [vmem:[#allocation2 + $0x198] sm:$0xff] }
  0x15   :  { %v56_v34 = vld [vmem:[#allocation2 + $0x60] sm:$0xff]  ;;  %v1525_v40 = vcombine.high %v45_v35, %v57_v36  ;;  %v1524_v48 = vcombine.low %v45_v35, %v57_v36  ;;  %v107_v56 = vld [vmem:[#allocation2 + $0x1f8] sm:$0xff]  ;;  %v1600_v60 = vcombine.low %v119_v44, %v131_v45  ;;  %v1575_v61 = vcombine.high %v94_v53, %v106_v54  ;;  %v70_v0 = vld [vmem:[#allocation2 + $0xd0] sm:$0xff] }
  0x16   :  { %v165_v27 = vcombine.high %v157_v23, %v157_v23  ;;  %v1523_v39 = vcombine.high %v44_v33, %v56_v34  ;;  %v1522_v47 = vcombine.low %v44_v33, %v56_v34  ;;  %v166_v51 = vcombine.high %v1763_v46, %v1763_v46  ;;  %v82_v1 = vld [vmem:[#allocation2 + $0x130] sm:$0xff]  ;;  %v71_v3 = vld [vmem:[#allocation2 + $0xd8] sm:$0xff]  ;;  %v1772_v17 = vld [vmem:[%s1893_s0 + $0x8] sm:$0xff] }
  0x17   :  { %v173_v52 = vrot.slane %v157_v23, %v1755_v18  ;;  %v1577_v62 = vcombine.high %v95_v55, %v107_v56  ;;  %v83_v4 = vld [vmem:[#allocation2 + $0x138] sm:$0xff]  ;;  %v1574_v5 = vcombine.low %v94_v53, %v106_v54  ;;  %v1576_v6 = vcombine.low %v95_v55, %v107_v56  ;;  %v46_v9 = vld [vmem:[#allocation2 + $0x10] sm:$0xff]  ;;  %v120_v19 = vld [vmem:[#allocation2 + $0x260] sm:$0xff] }
  0x18   :  { %v187_v31 = vrot.slane %v165_v27, %v1755_v18  ;;  %v194_v57 = vrot.slane %v166_v51, %v1755_v18  ;;  %v1551_v7 = vcombine.high %v70_v0, %v82_v1  ;;  %v1553_v8 = vcombine.high %v71_v3, %v83_v4  ;;  %v58_v10 = vld [vmem:[#allocation2 + $0x70] sm:$0xff]  ;;  %v47_v11 = vld [vmem:[#allocation2 + $0x18] sm:$0xff]  ;;  %v132_v20 = vld [vmem:[#allocation2 + $0x2c0] sm:$0xff] }
  0x19   :  { %v195_v58 = vcombine.high %v173_v52, %v173_v52  ;;  %v59_v12 = vld [vmem:[#allocation2 + $0x78] sm:$0xff]  ;;  %v1550_v13 = vcombine.low %v70_v0, %v82_v1  ;;  %v1552_v14 = vcombine.low %v71_v3, %v83_v4  ;;  %v1527_v15 = vcombine.high %v46_v9, %v58_v10  ;;  %v121_v21 = vld [vmem:[#allocation2 + $0x268] sm:$0xff]  ;;  %v72_v41 = vld [vmem:[#allocation2 + $0xe0] sm:$0xff] }
  0x1a   :  { %812 = vmatpush1.bf16.xpose.msra.mxu0 %v1570_v26  ;;  %833 = vmatprep.mubr.bf16.mxu0 %v187_v31  ;;  %v197_v32 = vcombine.high %v187_v31, %v187_v31  ;;  %v198_v63 = vcombine.high %v194_v57, %v194_v57  ;;  %v1529_v16 = vcombine.high %v47_v11, %v59_v12  ;;  %v133_v22 = vld [vmem:[#allocation2 + $0x2c8] sm:$0xff]  ;;  %v108_v31 = vld [vmem:[#allocation2 + $0x200] sm:$0xff]  ;;  %vm1511_vm8 = vcmask 419152  }
  0x1b   :  { %852 = vmatpush1.bf16.xpose.msra.mxu1 %v1572_v28  ;;  %813 = vmatprep.subr.bf16.mxu0 %v1547_v29  ;;  %v1776_v23 = vrot.slane %v1772_v17, %v1755_v18  ;;  %v1526_v24 = vcombine.low %v46_v9, %v58_v10  ;;  %v1528_v25 = vcombine.low %v47_v11, %v59_v12  ;;  %v109_v33 = vld [vmem:[#allocation2 + $0x208] sm:$0xff]  ;;  %v84_v42 = vld [vmem:[#allocation2 + $0x140] sm:$0xff]  ;;  %v111_v9 = vld [vmem:[#allocation2 + $0x218] sm:$0xff]  ;;  %vm1514_vm9 = vcmask 427424  }
  0x1c   :  { %853 = vmatprep.subr.bf16.mxu1 %v1549_v30  ;;  %873 = vmatprep.mubr.bf16.mxu1 %v197_v32  ;;  %v1603_v26 = vcombine.high %v120_v19, %v132_v20  ;;  %v1605_v27 = vcombine.high %v121_v21, %v133_v22  ;;  %v180_v29 = vrot.slane %v1763_v46, %v1755_v18  ;;  %v96_v30 = vld [vmem:[#allocation2 + $0x1a0] sm:$0xff]  ;;  %v97_v32 = vld [vmem:[#allocation2 + $0x1a8] sm:$0xff] }
  0x1d   :  { %v214_v28 = vcombine.high %v1776_v23, %v1776_v23  ;;  %v1602_v36 = vcombine.low %v120_v19, %v132_v20  ;;  %v73_v43 = vld [vmem:[#allocation2 + $0xe8] sm:$0xff]  ;;  %v1578_v45 = vcombine.low %v96_v30, %v108_v31  ;;  %v1580_v46 = vcombine.low %v97_v32, %v109_v33  ;;  %v86_v19 = vld [vmem:[#allocation2 + $0x150] sm:$0xff]  ;;  %v75_v20 = vld [vmem:[#allocation2 + $0xf8] sm:$0xff] }
  0x1e   :  { %v196_v35 = vcombine.high %v180_v29, %v180_v29  ;;  %v85_v44 = vld [vmem:[#allocation2 + $0x148] sm:$0xff]  ;;  %v1554_v53 = vcombine.low %v72_v41, %v84_v42 }
  0x1f   :  { %v236_v34 = vrot.slane %v214_v28, %v1755_v18  ;;  %v49_v51 = vld [vmem:[#allocation2 + $0x28] sm:$0xff]  ;;  %v1556_v54 = vcombine.low %v73_v43, %v85_v44  ;;  %v51_v28 = vld [vmem:[#allocation2 + $0x38] sm:$0xff] }
  0x22   :  { %814 = vmatpush1.bf16.xpose.msra.mxu0 %v1546_v37  ;;  %v1604_v37 = vcombine.low %v121_v21, %v133_v22  ;;  %v87_v21 = vld [vmem:[#allocation2 + $0x158] sm:$0xff] }
  0x23   :  { %854 = vmatpush1.bf16.xpose.msra.mxu1 %v1548_v38  ;;  %815 = vmatprep.subr.bf16.mxu0 %v1523_v39  ;;  %v1579_v38 = vcombine.high %v96_v30, %v108_v31  ;;  %v1581_v39 = vcombine.high %v97_v32, %v109_v33  ;;  %v1560_v31 = vcombine.low %v75_v20, %v87_v21 }
  0x24   :  { %855 = vmatprep.subr.bf16.mxu1 %v1525_v40  ;;  %v246_v40 = vcombine.high %v236_v34, %v236_v34 }
  0x2a   :  { %816 = vmatpush1.bf16.xpose.msra.mxu0 %v1522_v47  ;;  %v1555_v47 = vcombine.high %v72_v41, %v84_v42 }
  0x2b   :  { %856 = vmatpush1.bf16.xpose.msra.mxu1 %v1524_v48  ;;  %889 = vmatprep.subr.bf16.mxu0 %v1599_v49  ;;  %v1557_v48 = vcombine.high %v73_v43, %v85_v44  ;;  %v48_v49 = vld [vmem:[#allocation2 + $0x20] sm:$0xff] }
  0x2c   :  { %929 = vmatprep.subr.bf16.mxu1 %v1601_v50  ;;  %v60_v50 = vld [vmem:[#allocation2 + $0x80] sm:$0xff] }
  0x2d   :  { %v1531_v55 = vcombine.high %v48_v49, %v60_v50 }
  0x31   :  { %834 = vmatmul.mubr.bf16.vlgmr.msra.gmra.mxu0 %v173_v52  ;;  %v61_v52 = vld [vmem:[#allocation2 + $0x88] sm:$0xff] }
  0x32   :  { %874 = vmatmul.mubr.bf16.vlgmr.msra.gmra.mxu1 %v195_v58  ;;  %890 = vmatpush1.bf16.xpose.msra.mxu0 %v1598_v59  ;;  %v1533_v56 = vcombine.high %v49_v51, %v61_v52  ;;  %v122_v58 = vld [vmem:[#allocation2 + $0x270] sm:$0xff]  ;;  %v1532_v0 = vcombine.low %v49_v51, %v61_v52 }
  0x33   :  { %930 = vmatpush1.bf16.xpose.msra.mxu1 %v1600_v60  ;;  %891 = vmatprep.subr.bf16.mxu0 %v1575_v61  ;;  %v134_v59 = vld [vmem:[#allocation2 + $0x2d0] sm:$0xff]  ;;  %v123_v60 = vld [vmem:[#allocation2 + $0x278] sm:$0xff] }
  0x34   :  { %931 = vmatprep.subr.bf16.mxu1 %v1577_v62  ;;  %913 = vmatprep.mubr.bf16.mxu0 %v194_v57  ;;  %v199_v57 = vcombine.high %v1772_v17, %v1772_v17  ;;  %v135_v61 = vld [vmem:[#allocation2 + $0x2d8] sm:$0xff]  ;;  %v1607_v1 = vcombine.high %v122_v58, %v134_v59  ;;  %v1606_v12 = vcombine.low %v122_v58, %v134_v59  ;;  %v74_v17 = vld [vmem:[#allocation2 + $0xf0] sm:$0xff]  ;;  %v88_v58 = vld [vmem:[#allocation2 + $0x160] sm:$0xff] }
  0x35   :  { %953 = vmatprep.mubr.bf16.mxu1 %v198_v63  ;;  %v1530_v63 = vcombine.low %v48_v49, %v60_v50  ;;  %v1609_v3 = vcombine.high %v123_v60, %v135_v61  ;;  %v1558_v30 = vcombine.low %v74_v17, %v86_v19  ;;  %v113_v49 = vld [vmem:[#allocation2 + $0x228] sm:$0xff] }
  0x36   :  { %v1786_v62 = vrot.slane %v199_v57, %v1755_v18  ;;  %v76_v57 = vld [vmem:[#allocation2 + $0x100] sm:$0xff]  ;;  %v77_v59 = vld [vmem:[#allocation2 + $0x108] sm:$0xff] }
  0x38   :  { %v215_v4 = vcombine.high %v1786_v62, %v1786_v62 }
  0x3a   :  { %892 = vmatpush1.bf16.xpose.msra.mxu0 %v1574_v5  ;;  %v222_v5 = vrot.slane %v1776_v23, %v1755_v18  ;;  %v243_v10 = vrot.slane %v215_v4, %v1755_v18  ;;  %v53_v4 = vld [vmem:[#allocation2 + $0x48] sm:$0xff] }
  0x3b   :  { %932 = vmatpush1.bf16.xpose.msra.mxu1 %v1576_v6  ;;  %893 = vmatprep.subr.bf16.mxu0 %v1551_v7  ;;  %v98_v6 = vld [vmem:[#allocation2 + $0x1b0] sm:$0xff] }
  0x3c   :  { %933 = vmatprep.subr.bf16.mxu1 %v1553_v8  ;;  %v110_v7 = vld [vmem:[#allocation2 + $0x210] sm:$0xff]  ;;  %v99_v8 = vld [vmem:[#allocation2 + $0x1b8] sm:$0xff]  ;;  %v244_v11 = vcombine.high %v222_v5, %v222_v5 }
  0x3d   :  { %v1582_v22 = vcombine.low %v98_v6, %v110_v7  ;;  %v1584_v23 = vcombine.low %v99_v8, %v111_v9 }
  0x42   :  { %894 = vmatpush1.bf16.xpose.msra.mxu0 %v1550_v13  ;;  %v1608_v13 = vcombine.low %v123_v60, %v135_v61  ;;  %v89_v60 = vld [vmem:[#allocation2 + $0x168] sm:$0xff] }
  0x43   :  { %934 = vmatpush1.bf16.xpose.msra.mxu1 %v1552_v14  ;;  %895 = vmatprep.subr.bf16.mxu0 %v1527_v15  ;;  %v1583_v14 = vcombine.high %v98_v6, %v110_v7  ;;  %v1585_v15 = vcombine.high %v99_v8, %v111_v9  ;;  %v1562_v6 = vcombine.low %v76_v57, %v88_v58 }
  0x44   :  { %935 = vmatprep.subr.bf16.mxu1 %v1529_v16  ;;  %v247_v16 = vcombine.high %v243_v10, %v243_v10  ;;  %v1564_v7 = vcombine.low %v77_v59, %v89_v60 }
  0x4a   :  { %896 = vmatpush1.bf16.xpose.msra.mxu0 %v1526_v24  ;;  %v1559_v24 = vcombine.high %v74_v17, %v86_v19 }
  0x4b   :  { %936 = vmatpush1.bf16.xpose.msra.mxu1 %v1528_v25  ;;  %969 = vmatprep.subr.bf16.mxu0 %v1603_v26  ;;  %v1561_v25 = vcombine.high %v75_v20, %v87_v21  ;;  %v50_v26 = vld [vmem:[#allocation2 + $0x30] sm:$0xff] }
  0x4c   :  { %1009 = vmatprep.subr.bf16.mxu1 %v1605_v27  ;;  %v62_v27 = vld [vmem:[#allocation2 + $0x90] sm:$0xff] }
  0x4d   :  { %v1535_v32 = vcombine.high %v50_v26, %v62_v27 }
  0x51   :  { %914 = vmatmul.mubr.bf16.vlgmr.msra.gmra.mxu0 %v180_v29  ;;  %v63_v29 = vld [vmem:[#allocation2 + $0x98] sm:$0xff] }
  0x52   :  { %954 = vmatmul.mubr.bf16.vlgmr.msra.gmra.mxu1 %v196_v35  ;;  %970 = vmatpush1.bf16.xpose.msra.mxu0 %v1602_v36  ;;  %v1537_v33 = vcombine.high %v51_v28, %v63_v29  ;;  %v124_v35 = vld [vmem:[#allocation2 + $0x280] sm:$0xff]  ;;  %v1536_v41 = vcombine.low %v51_v28, %v63_v29 }
  0x53   :  { %1010 = vmatpush1.bf16.xpose.msra.mxu1 %v1604_v37  ;;  %971 = vmatprep.subr.bf16.mxu0 %v1579_v38  ;;  %v136_v36 = vld [vmem:[#allocation2 + $0x2e0] sm:$0xff]  ;;  %v125_v37 = vld [vmem:[#allocation2 + $0x288] sm:$0xff] }
  0x54   :  { %1011 = vmatprep.subr.bf16.mxu1 %v1581_v39  ;;  %993 = vmatprep.mubr.bf16.mxu0 %v236_v34  ;;  %v1796_v34 = vld [vmem:[%s1893_s0 + $0x10] sm:$0xff]  ;;  %v137_v38 = vld [vmem:[#allocation2 + $0x2e8] sm:$0xff]  ;;  %v1611_v42 = vcombine.high %v124_v35, %v136_v36  ;;  %v1610_v52 = vcombine.low %v124_v35, %v136_v36  ;;  %v79_v36 = vld [vmem:[#allocation2 + $0x118] sm:$0xff] }
  0x55   :  { %1033 = vmatprep.mubr.bf16.mxu1 %v246_v40  ;;  %v1800_v39 = vrot.slane %v1796_v34, %v1755_v18  ;;  %v1534_v40 = vcombine.low %v50_v26, %v62_v27  ;;  %v1613_v43 = vcombine.high %v125_v37, %v137_v38  ;;  %v115_v26 = vld [vmem:[#allocation2 + $0x238] sm:$0xff]  ;;  %v90_v35 = vld [vmem:[#allocation2 + $0x170] sm:$0xff] }
  0x57   :  { %v263_v44 = vcombine.high %v1800_v39, %v1800_v39 }
  0x59   :  { %v285_v50 = vrot.slane %v263_v44, %v1755_v18  ;;  %v55_v44 = vld [vmem:[#allocation2 + $0x58] sm:$0xff] }
  0x5a   :  { %972 = vmatpush1.bf16.xpose.msra.mxu0 %v1578_v45  ;;  %v229_v45 = vrot.slane %v1786_v62, %v1755_v18 }
  0x5b   :  { %1012 = vmatpush1.bf16.xpose.msra.mxu1 %v1580_v46  ;;  %973 = vmatprep.subr.bf16.mxu0 %v1555_v47  ;;  %v100_v46 = vld [vmem:[#allocation2 + $0x1c0] sm:$0xff] }
  0x5c   :  { %1013 = vmatprep.subr.bf16.mxu1 %v1557_v48  ;;  %v112_v47 = vld [vmem:[#allocation2 + $0x220] sm:$0xff]  ;;  %v101_v48 = vld [vmem:[#allocation2 + $0x1c8] sm:$0xff]  ;;  %v245_v51 = vcombine.high %v229_v45, %v229_v45 }
  0x5d   :  { %v1586_v61 = vcombine.low %v100_v46, %v112_v47  ;;  %v1588_v62 = vcombine.low %v101_v48, %v113_v49 }
  0x62   :  { %974 = vmatpush1.bf16.xpose.msra.mxu0 %v1554_v53  ;;  %v1612_v53 = vcombine.low %v125_v37, %v137_v38  ;;  %v91_v37 = vld [vmem:[#allocation2 + $0x178] sm:$0xff] }
  0x63   :  { %1014 = vmatpush1.bf16.xpose.msra.mxu1 %v1556_v54  ;;  %975 = vmatprep.subr.bf16.mxu0 %v1531_v55  ;;  %v1587_v54 = vcombine.high %v100_v46, %v112_v47  ;;  %v1589_v55 = vcombine.high %v101_v48, %v113_v49  ;;  %v1568_v47 = vcombine.low %v79_v36, %v91_v37 }
  0x64   :  { %1015 = vmatprep.subr.bf16.mxu1 %v1533_v56  ;;  %v295_v56 = vcombine.high %v285_v50, %v285_v50 }
  0x6a   :  { %976 = vmatpush1.bf16.xpose.msra.mxu0 %v1530_v63  ;;  %v1563_v63 = vcombine.high %v76_v57, %v88_v58 }
  0x6b   :  { %1016 = vmatpush1.bf16.xpose.msra.mxu1 %v1532_v0  ;;  %1049 = vmatprep.subr.bf16.mxu0 %v1607_v1  ;;  %v1565_v0 = vcombine.high %v77_v59, %v89_v60  ;;  %v52_v1 = vld [vmem:[#allocation2 + $0x40] sm:$0xff] }
  0x6c   :  { %1089 = vmatprep.subr.bf16.mxu1 %v1609_v3  ;;  %v64_v3 = vld [vmem:[#allocation2 + $0xa0] sm:$0xff] }
  0x6d   :  { %v1539_v8 = vcombine.high %v52_v1, %v64_v3 }
  0x71   :  { %994 = vmatmul.mubr.bf16.vlgmr.msra.gmra.mxu0 %v222_v5  ;;  %v65_v5 = vld [vmem:[#allocation2 + $0xa8] sm:$0xff] }
  0x72   :  { %1034 = vmatmul.mubr.bf16.vlgmr.msra.gmra.mxu1 %v244_v11  ;;  %1050 = vmatpush1.bf16.xpose.msra.mxu0 %v1606_v12  ;;  %v1541_v9 = vcombine.high %v53_v4, %v65_v5  ;;  %v126_v11 = vld [vmem:[#allocation2 + $0x290] sm:$0xff]  ;;  %v1540_v17 = vcombine.low %v53_v4, %v65_v5  ;;  %v1287_v4 = vld [vmem:[%s1896_s3 + $0x28] sm:$0xff]  ;;  %v1286_v5 = vld [vmem:[%s1896_s3 + $0x20] sm:$0xff] }
  0x73   :  { %1090 = vmatpush1.bf16.xpose.msra.mxu1 %v1608_v13  ;;  %1051 = vmatprep.subr.bf16.mxu0 %v1583_v14  ;;  %v138_v12 = vld [vmem:[#allocation2 + $0x2f0] sm:$0xff]  ;;  %v127_v13 = vld [vmem:[#allocation2 + $0x298] sm:$0xff] }
  0x74   :  { %1091 = vmatprep.subr.bf16.mxu1 %v1585_v15  ;;  %1073 = vmatprep.mubr.bf16.mxu0 %v243_v10  ;;  %v248_v10 = vcombine.high %v1796_v34, %v1796_v34  ;;  %v139_v14 = vld [vmem:[#allocation2 + $0x2f8] sm:$0xff]  ;;  %v1615_v19 = vcombine.high %v126_v11, %v138_v12  ;;  %v1614_v29 = vcombine.low %v126_v11, %v138_v12  ;;  %v78_v34 = vld [vmem:[#allocation2 + $0x110] sm:$0xff] }
  0x75   :  { %1113 = vmatprep.mubr.bf16.mxu1 %v247_v16  ;;  %v1538_v16 = vcombine.low %v52_v1, %v64_v3  ;;  %v1617_v20 = vcombine.high %v127_v13, %v139_v14  ;;  %v1566_v46 = vcombine.low %v78_v34, %v90_v35  ;;  %v1707_v1 = vmov 0.0   ;;  %v1288_v3 = vld [vmem:[%s1896_s3 + $0x30] sm:$0xff] }
  0x76   :  { %v262_v15 = vrot.slane %v248_v10, %v1755_v18  ;;  %1498 = vst [vmem:[%s1900_s7] sm:$0x3] %v1707_v1  ;;  %v1284_v11 = vld [vmem:[%s1896_s3 + $0x10] sm:$0xff] }
  0x78   :  { %v264_v21 = vcombine.high %v262_v15, %v262_v15 }
  0x7a   :  { %1052 = vmatpush1.bf16.xpose.msra.mxu0 %v1582_v22  ;;  %v271_v22 = vrot.slane %v1800_v39, %v1755_v18  ;;  %v292_v27 = vrot.slane %v264_v21, %v1755_v18  ;;  %v1375_v21 = vld [vmem:[%s1898_s5 + $0x18] sm:$0xff] }
  0x7b   :  { %1092 = vmatpush1.bf16.xpose.msra.mxu1 %v1584_v23  ;;  %1053 = vmatprep.subr.bf16.mxu0 %v1559_v24  ;;  %v102_v23 = vld [vmem:[#allocation2 + $0x1d0] sm:$0xff] }
  0x7c   :  { %1093 = vmatprep.subr.bf16.mxu1 %v1561_v25  ;;  %v114_v24 = vld [vmem:[#allocation2 + $0x230] sm:$0xff]  ;;  %v103_v25 = vld [vmem:[#allocation2 + $0x1d8] sm:$0xff]  ;;  %v293_v28 = vcombine.high %v271_v22, %v271_v22 }
  0x7d   :  { %v1590_v38 = vcombine.low %v102_v23, %v114_v24  ;;  %v1592_v39 = vcombine.low %v103_v25, %v115_v26 }
  0x82   :  { %1054 = vmatpush1.bf16.xpose.msra.mxu0 %v1558_v30  ;;  %v1616_v30 = vcombine.low %v127_v13, %v139_v14 }
  0x83   :  { %1094 = vmatpush1.bf16.xpose.msra.mxu1 %v1560_v31  ;;  %1055 = vmatprep.subr.bf16.mxu0 %v1535_v32  ;;  %v1591_v31 = vcombine.high %v102_v23, %v114_v24  ;;  %v1593_v32 = vcombine.high %v103_v25, %v115_v26 }
  0x84   :  { %1095 = vmatprep.subr.bf16.mxu1 %v1537_v33  ;;  %v296_v33 = vcombine.high %v292_v27, %v292_v27 }
  0x8a   :  { %1056 = vmatpush1.bf16.xpose.msra.mxu0 %v1534_v40  ;;  %v1567_v40 = vcombine.high %v78_v34, %v90_v35 }
  0x8b   :  { %1096 = vmatpush1.bf16.xpose.msra.mxu1 %v1536_v41  ;;  %1129 = vmatprep.subr.bf16.mxu0 %v1611_v42  ;;  %v1569_v41 = vcombine.high %v79_v36, %v91_v37  ;;  %v54_v42 = vld [vmem:[#allocation2 + $0x50] sm:$0xff] }
  0x8c   :  { %1169 = vmatprep.subr.bf16.mxu1 %v1613_v43  ;;  %v66_v43 = vld [vmem:[#allocation2 + $0xb0] sm:$0xff] }
  0x8d   :  { %v1543_v48 = vcombine.high %v54_v42, %v66_v43 }
  0x91   :  { %1074 = vmatmul.mubr.bf16.vlgmr.msra.gmra.mxu0 %v229_v45  ;;  %v67_v45 = vld [vmem:[#allocation2 + $0xb8] sm:$0xff] }
  0x92   :  { %1114 = vmatmul.mubr.bf16.vlgmr.msra.gmra.mxu1 %v245_v51  ;;  %1130 = vmatpush1.bf16.xpose.msra.mxu0 %v1610_v52  ;;  %v1545_v49 = vcombine.high %v55_v44, %v67_v45  ;;  %v1544_v51 = vcombine.low %v55_v44, %v67_v45  ;;  %v278_v52 = vrot.slane %v262_v15, %v1755_v18  ;;  %v1289_v18 = vld [vmem:[%s1896_s3 + $0x38] sm:$0xff]  ;;  %v1283_v15 = vld [vmem:[%s1896_s3 + $0x8] sm:$0xff] }
  0x93   :  { %1170 = vmatpush1.bf16.xpose.msra.mxu1 %v1612_v53  ;;  %1131 = vmatprep.subr.bf16.mxu0 %v1587_v54  ;;  %v1521_v54 = vld [vmem:[%s1895_s2] ss:$0 sm:$0xff] }
  0x94   :  { %1171 = vmatprep.subr.bf16.mxu1 %v1589_v55  ;;  %1153 = vmatprep.mubr.bf16.mxu0 %v285_v50  ;;  %v1542_v50 = vcombine.low %v54_v42, %v66_v43  ;;  %v294_v53 = vcombine.high %v278_v52, %v278_v52 }
  0x95   :  { %1193 = vmatprep.mubr.bf16.mxu1 %v295_v56 }
  0x9a   :  { %1132 = vmatpush1.bf16.xpose.msra.mxu0 %v1586_v61 }
  0x9b   :  { %1172 = vmatpush1.bf16.xpose.msra.mxu1 %v1588_v62  ;;  %1133 = vmatprep.subr.bf16.mxu0 %v1563_v63 }
  0x9c   :  { %1173 = vmatprep.subr.bf16.mxu1 %v1565_v0 }
  0xa2   :  { %1134 = vmatpush1.bf16.xpose.msra.mxu0 %v1562_v6 }
  0xa3   :  { %1174 = vmatpush1.bf16.xpose.msra.mxu1 %v1564_v7  ;;  %1135 = vmatprep.subr.bf16.mxu0 %v1539_v8  ;;  %v1285_v7 = vld [vmem:[%s1896_s3 + $0x18] sm:$0xff] }
  0xa4   :  { %1175 = vmatprep.subr.bf16.mxu1 %v1541_v9 }
  0xaa   :  { %1136 = vmatpush1.bf16.xpose.msra.mxu0 %v1538_v16 }
  0xab   :  { %1176 = vmatpush1.bf16.xpose.msra.mxu1 %v1540_v17  ;;  %1209 = vmatprep.subr.bf16.mxu0 %v1615_v19  ;;  %v1282_v19 = vld [vmem:[%s1896_s3] sm:$0xff] }
  0xac   :  { %1249 = vmatprep.subr.bf16.mxu1 %v1617_v20 }
  0xb1   :  { %1154 = vmatmul.mubr.bf16.vlgmr.msra.gmra.mxu0 %v271_v22  ;;  %v1374_v22 = vld [vmem:[%s1898_s5 + $0x10] sm:$0xff] }
  0xb2   :  { %1194 = vmatmul.mubr.bf16.vlgmr.msra.gmra.mxu1 %v293_v28  ;;  %1210 = vmatpush1.bf16.xpose.msra.mxu0 %v1614_v29 }
  0xb3   :  { %1250 = vmatpush1.bf16.xpose.msra.mxu1 %v1616_v30  ;;  %1211 = vmatprep.subr.bf16.mxu0 %v1591_v31 }
  0xb4   :  { %1251 = vmatprep.subr.bf16.mxu1 %v1593_v32  ;;  %1233 = vmatprep.mubr.bf16.mxu0 %v292_v27 }
  0xb5   :  { %1273 = vmatprep.mubr.bf16.mxu1 %v296_v33 }
  0xba   :  { %1212 = vmatpush1.bf16.xpose.msra.mxu0 %v1590_v38 }
  0xbb   :  { %1252 = vmatpush1.bf16.xpose.msra.mxu1 %v1592_v39  ;;  %1213 = vmatprep.subr.bf16.mxu0 %v1567_v40 }
  0xbc   :  { %1253 = vmatprep.subr.bf16.mxu1 %v1569_v41 }
  0xc2   :  { %1214 = vmatpush1.bf16.xpose.msra.mxu0 %v1566_v46 }
  0xc3   :  { %1254 = vmatpush1.bf16.xpose.msra.mxu1 %v1568_v47  ;;  %1215 = vmatprep.subr.bf16.mxu0 %v1543_v48 }
  0xc4   :  { %1255 = vmatprep.subr.bf16.mxu1 %v1545_v49 }
  0xca   :  { %1216 = vmatpush1.bf16.xpose.msra.mxu0 %v1542_v50 }
  0xcb   :  { %1256 = vmatpush1.bf16.xpose.msra.mxu1 %v1544_v51  ;;  %1636 = vmatprep.subr.mxu0 %v1707_v1 }
  0xcc   :  { %1655 = vmatprep.subr.mxu1 %v1707_v1 }
  0xd1   :  { %1234 = vmatmul.mubr.bf16.vlgmr.msra.gmra.mxu0 %v278_v52 }
  0xd2   :  { %1274 = vmatmul.mubr.bf16.vlgmr.msra.gmra.mxu1 %v294_v53  ;;  %1637 = vmatpush3.msra.mxu0 %v1289_v18  ;;  %v1372_v18 = vld [vmem:[%s1898_s5] sm:$0xff] }
  0xd3   :  { %1638 = vmatprep.subr.mxu0 %v1707_v1  ;;  %1652 = vmatprep.mubr.msk.f32.mxu0 %vm1708_vm0, %v1707_v1 }
  0xd4   :  { %1639 = vmatpush3.msra.mxu0 %v1288_v3  ;;  %1656 = vmatpush3.msra.mxu1 %v1375_v21  ;;  %v1618_v3 = vld [vmem:[%s1897_s4] ss:$0 sm:$0xff]  ;;  %s1709_s4 = smov 42  }
  0xd5   :  { %1640 = vmatprep.subr.mxu0 %v1707_v1  ;;  %1663 = vmatprep.mubr.msk.f32.mxu1 %vm1708_vm0, %v1707_v1 }
  0xd6   :  { %1641 = vmatpush3.msra.mxu0 %v1287_v4  ;;  %1657 = vmatprep.subr.mxu1 %v1707_v1 }
  0xd7   :  { %1642 = vmatprep.subr.mxu0 %v1707_v1  ;;  %1658 = vmatpush3.msra.mxu1 %v1374_v22 }
  0xd8   :  { %1643 = vmatpush3.msra.mxu0 %v1286_v5  ;;  %1659 = vmatprep.subr.mxu1 %v1707_v1 }
  0xd9   :  { %1644 = vmatprep.subr.mxu0 %v1707_v1 }
  0xda   :  { %1645 = vmatpush3.msra.mxu0 %v1285_v7 }
  0xdb   :  { %1646 = vmatprep.subr.mxu0 %v1707_v1 }
  0xdc   :  { %1647 = vmatpush3.msra.mxu0 %v1284_v11 }
  0xdd   :  { %1648 = vmatprep.subr.mxu0 %v1707_v1 }
  0xde   :  { %1649 = vmatpush3.msra.mxu0 %v1283_v15 }
  0xdf   :  { %1650 = vmatprep.subr.mxu0 %v1707_v1 }
  0xe0   :  { %1651 = vmatpush3.msra.mxu0 %v1282_v19 }
  0xf1   :  { %v835_v55 = vpop.f32.mrf.mxu0 }
  0xf2   :  { %v836_v56 = vadd.f32 %v1521_v54, %v835_v55  ;;  %v875_v57 = vpop.f32.mrf.mxu1 }
  0xf3   :  { %v837_v58 = vpop.f32.mrf.mxu0 }
  0xf4   :  { %v876_v59 = vadd.f32 %v875_v57, %v836_v56  ;;  %v877_v60 = vpop.f32.mrf.mxu1 }
  0xf5   :  { %v838_v61 = vpop.f32.mrf.mxu0 }
  0xf6   :  { %v878_v62 = vpop.f32.mrf.mxu1 }
  0xf7   :  { %v839_v63 = vpop.f32.mrf.mxu0 }
  0xf8   :  { %v879_v0 = vpop.f32.mrf.mxu1 }
  0xf9   :  { %v1373_v0 = vld [vmem:[%s1898_s5 + $0x8] sm:$0xff] }
  0xfa   :  { %1660 = vmatpush3.msra.mxu1 %v1373_v0 }
  0xfb   :  { %1661 = vmatprep.subr.mxu1 %v1707_v1  ;;  %v1620_v1 = vld [vmem:[%s1899_s6] ss:$0 sm:$0xff]  ;;  %s1710_s6 = smov 32  }
  0xfc   :  { %1662 = vmatpush3.msra.mxu1 %v1372_v18 }
 0x111   :  { %v915_v6 = vpop.f32.mrf.mxu0 }
 0x112   :  { %v916_v8 = vadd.f32 %v915_v6, %v876_v59  ;;  %v955_v9 = vpop.f32.mrf.mxu1 }
 0x113   :  { %v917_v10 = vpop.f32.mrf.mxu0 }
 0x114   :  { %v956_v12 = vadd.f32 %v955_v9, %v916_v8  ;;  %v957_v13 = vpop.f32.mrf.mxu1 }
 0x115   :  { %v918_v14 = vpop.f32.mrf.mxu0 }
 0x116   :  { %v958_v16 = vpop.f32.mrf.mxu1 }
 0x117   :  { %v919_v17 = vpop.f32.mrf.mxu0 }
 0x118   :  { %v959_v20 = vpop.f32.mrf.mxu1 }
 0x131   :  { %v995_v23 = vpop.f32.mrf.mxu0 }
 0x132   :  { %v996_v24 = vadd.f32 %v995_v23, %v956_v12  ;;  %v1035_v25 = vpop.f32.mrf.mxu1 }
 0x133   :  { %v997_v26 = vpop.f32.mrf.mxu0 }
 0x134   :  { %v1036_v27 = vadd.f32 %v1035_v25, %v996_v24  ;;  %v1037_v28 = vpop.f32.mrf.mxu1  ;;  %v1480_v26 = vand.u32 127, %v154_v2 }
 0x135   :  { %v998_v29 = vpop.f32.mrf.mxu0 }
 0x136   :  { %v1038_v30 = vpop.f32.mrf.mxu1 }
 0x137   :  { %v999_v31 = vpop.f32.mrf.mxu0 }
 0x138   :  { %v1039_v32 = vpop.f32.mrf.mxu1 }
 0x151   :  { %v1075_v33 = vpop.f32.mrf.mxu0 }
 0x152   :  { %v1115_v34 = vpop.f32.mrf.mxu1  ;;  %v1076_v49 = vadd.f32 %v1075_v33, %v1036_v27 }
 0x153   :  { %v1077_v35 = vpop.f32.mrf.mxu0 }
 0x154   :  { %v1117_v36 = vpop.f32.mrf.mxu1  ;;  %v1116_v50 = vadd.f32 %v1115_v34, %v1076_v49 }
 0x155   :  { %v1078_v37 = vpop.f32.mrf.mxu0 }
 0x156   :  { %v1118_v38 = vpop.f32.mrf.mxu1 }
 0x157   :  { %v1079_v39 = vpop.f32.mrf.mxu0 }
 0x158   :  { %v1119_v40 = vpop.f32.mrf.mxu1 }
 0x171   :  { %v1155_v41 = vpop.f32.mrf.mxu0 }
 0x172   :  { %v1195_v42 = vpop.f32.mrf.mxu1  ;;  %v1156_v51 = vadd.f32 %v1155_v41, %v1116_v50 }
 0x173   :  { %v1157_v43 = vpop.f32.mrf.mxu0 }
 0x174   :  { %v1197_v44 = vpop.f32.mrf.mxu1  ;;  %v1196_v52 = vadd.f32 %v1195_v42, %v1156_v51 }
 0x175   :  { %v1158_v45 = vpop.f32.mrf.mxu0 }
 0x176   :  { %v1198_v46 = vpop.f32.mrf.mxu1 }
 0x177   :  { %v1159_v47 = vpop.f32.mrf.mxu0 }
 0x178   :  { %v1199_v48 = vpop.f32.mrf.mxu1 }
 0x191   :  { %v1235_v53 = vpop.f32.mrf.mxu0 }
 0x192   :  { %v1236_v54 = vadd.f32 %v1235_v53, %v1196_v52  ;;  %v1275_v55 = vpop.f32.mrf.mxu1 }
 0x193   :  { %v1237_v56 = vpop.f32.mrf.mxu0 }
 0x194   :  { %v1276_v57 = vadd.f32 %v1275_v55, %v1236_v54  ;;  %v1277_v58 = vpop.f32.mrf.mxu1 }
 0x195   :  { %v1238_v59 = vpop.f32.mrf.mxu0 }
 0x196   :  { %v1281_v60 = vmax.f32 %v1276_v57, 0.0  ;;  %v1278_v61 = vpop.f32.mrf.mxu1 }
 0x197   :  { %v1239_v62 = vpop.f32.mrf.mxu0 }
 0x198   :  { %v1279_v63 = vpop.f32.mrf.mxu1  ;;  %1653 = vmatmul.mubr.msk.f32.vlgmr.msra.gmra.mxu0 %vm1297_vm1, %v1281_v60 }
 0x258   :  { %v1367_v4 = vpop.f32.mrf.mxu0 }
 0x259   :  { %v1368_v5 = vadd.f32 %v1618_v3, %v1367_v4 }
 0x25a   :  { %v1654_v6 = vpop.f32.mrf.mxu0 }
 0x25b   :  { %v1371_v7 = vmax.f32 %v1368_v5, 0.0 }
 0x25d   :  { %1664 = vmatmul.mubr.msk.f32.vlgmr.msra.gmra.mxu1 %vm1383_vm2, %v1371_v7  ;;  %1500 = vst.msk [vmem:[%s1900_s7] sm:$0x3] %vm1499_vm3, %v1371_v7 }
 0x31d   :  { %v1453_v8 = vpop.f32.mrf.mxu1 }
 0x31e   :  { %v1454_v9 = vadd.f32 %v1620_v1, %v1453_v8 }
 0x31f   :  { %v1665_v10 = vpop.f32.mrf.mxu1 }
 0x320   :  { %v1458_v11 = vsel %vm1457_vm4, %v1454_v9, -inf }
 0x321   :  { %1477 = vmax.xlane.f32.xlu0 %v1458_v11  ;;  %v1459_v12 = vrot.slane %v1458_v11, 4 }
 0x323   :  { %v1460_v13 = vmax.f32 %v1458_v11, %v1459_v12 }
 0x325   :  { %v1461_v14 = vrot.slane %v1460_v13, 2 }
 0x327   :  { %v1462_v15 = vmax.f32 %v1460_v13, %v1461_v14 }
 0x329   :  { %v1463_v16 = vrot.slane %v1462_v15, 1 }
 0x32b   :  { %v1464_v17 = vmax.f32 %v1462_v15, %v1463_v16 }
 0x32d   :  { %v1465_v19 = vsub.f32 %v1454_v9, %v1464_v17 }
 0x32f   :  { %v1466_v20 = vmul.f32 1.442695, %v1465_v19 }
 0x331   :  { %1677 = vpow2.f32 %v1466_v20 }
 0x33e   :  { %v1678_v21 = vpop.eup %1677 }
 0x33f   :  { %v1468_v22 = vsel %vm1457_vm4, %v1678_v21, 0.0 }
 0x340   :  { %v1469_v23 = vrot.slane %v1468_v22, 4 }
 0x342   :  { %v1470_v24 = vadd.f32 %v1469_v23, %v1468_v22 }
 0x344   :  { %v1471_v25 = vrot.slane %v1470_v24, 2 }
 0x346   :  { %v1472_v27 = vadd.f32 %v1471_v25, %v1470_v24 }
 0x348   :  { %v1473_v31 = vrot.slane %v1472_v27, 1 }
 0x34a   :  { %v1474_v34 = vadd.f32 %v1473_v31, %v1472_v27 }
 0x34c   :  { %1679 = vrcp.f32 %v1474_v34 }
 0x359   :  { %v1680_v35 = vpop.eup %1679 }
 0x35a   :  { %v1476_v36 = vmul.f32 %v1680_v35, %v1678_v21 }
 0x3aa   :  { %v1478_v28 = vpop.xlane.xlu0 %1477 }
 0x3ab   :  { %vm1481_vm5 = vcmp.eq.f32.partialorder %v1454_v9, %v1478_v28 }
 0x3ac   :  { %v1482_v29 = vsel %vm1481_vm5, %v1480_v26, 2147483647 }
 0x3ad   :  { %v1483_v30 = vsel %vm1457_vm4, %v1482_v29, 2147483647 }
 0x3ae   :  { %v1485_v32 = vshra.s32 %v1483_v30, 16  ;;  %v1484_v37 = vand.u32 65535, %v1483_v30 }
 0x3b0   :  { %v1487_v33 = vcvt.s32.f32 %v1485_v32  ;;  %v1486_v39 = vcvt.s32.f32 %v1484_v37 }
 0x3b2   :  { %1488 = vmin.xlane.f32.xlu0 %v1487_v33 }
 0x3c8   :  { %1508 = vrot.lane.b32.xlu0 %v1476_v36, %s1709_s4 }
 0x43b   :  { %v1489_v38 = vpop.xlane.xlu0 %1488 }
 0x43c   :  { %vm1490_vm6 = vcmp.eq.f32.partialorder %v1487_v33, %v1489_v38  ;;  %v1495_v40 = vcvt.f32.s32 %v1489_v38 }
 0x43d   :  { %v1491_v2 = vsel %vm1490_vm6, %v1486_v39, inf }
 0x43e   :  { %1492 = vmin.xlane.f32.xlu1 %v1491_v2  ;;  %v1496_v42 = vshll.u32 %v1495_v40, 16 }
 0x43f   :  { %v1509_v46 = vpop.permute.xlu0 %1508 }
 0x44f   :  { %1502 = vrot.lane.b32.xlu1 %v1454_v9, %s1710_s6 }
 0x4c7   :  { %v1493_v41 = vpop.xlane.xlu1 %1492 }
 0x4c8   :  { %v1494_v43 = vcvt.f32.s32 %v1493_v41 }
 0x4ca   :  { %v1497_v44 = vadd.s32 %v1496_v42, %v1494_v43 }
 0x4cb   :  { %v1503_v45 = vpop.permute.xlu1 %1502 }
 0x4cc   :  { %v1513_v47 = vcvt.s32.f32 %v1497_v44  ;;  %1506 = vst.msk [vmem:[%s1900_s7] sm:$0x3] %vm1505_vm7, %v1503_v45 }
 0x4cd   :  { %1512 = vst.msk [vmem:[%s1900_s7] sm:$0x3] %vm1511_vm8, %v1509_v46 }
 0x4ce   :  { %1515 = vst.msk [vmem:[%s1900_s7] sm:$0x3] %vm1514_vm9, %v1513_v47 }
 0x4cf   :  { %1520 = vsyncpa [#allocation3], 1 }

</bundles_post_ra>
